<compile_context>
chip_gen: v5e
topology: v5e:2x2
jax: 0.10.0
libtpu: 0.0.40
codegen_flags: <defaults>
</compile_context>

<pallas_src>
import jax
import jax.numpy as jnp
from jax.experimental import pallas as pl
from jax.experimental.pallas import tpu as pltpu


def _round_up(x, m):
    return ((x + m - 1) // m) * m


def rnn_fused_kernel(x_ref, wih_t_ref, whh_t_ref, bias_ref, h0_ref,
                     out_ref, h_scratch):
    """Fused input-projection + tanh-RNN recurrence for one (batch, time) block.

    x_ref:     (bb, bt, I)   input slab (batch-first, pipelined)
    wih_t_ref: (I,  Hp)      W_ih^T, resident in VMEM (single copy)
    whh_t_ref: (Hp, Hp)      W_hh^T, resident in VMEM (single copy)
    bias_ref:  (1,  Hp)      b_ih + b_hh, resident in VMEM
    h0_ref:    (bb, Hp)      initial hidden state for this batch block
    out_ref:   (bb, bt, Hp)  hidden states, written batch-first
    h_scratch: (bb, Hp) f32  recurrent carry, persists across time blocks
    """
    @pl.when(pl.program_id(1) == 0)          # first time block of this batch block
    def _():
        h_scratch[...] = h0_ref[...].astype(jnp.float32)

    bb, bt, _ = x_ref.shape
    hp = out_ref.shape[-1]
    wih = wih_t_ref[...]
    whh = whh_t_ref[...]
    # Hoist the bias broadcast out of the unrolled loop (JAX does not CSE it).
    bias = jnp.broadcast_to(bias_ref[...].astype(jnp.float32), (bb, hp))

    h = h_scratch[...]
    # Static unroll over the time block (bt kept modest so vreg pressure and
    # code size stay bounded).  The x-projection dot has no dependence on h,
    # so it can overlap the previous step's recurrent dot on the MXU.
    # TODO(synk): sweep partial unroll for large bb*Hp.
    for s in range(bt):
        zx = jnp.dot(x_ref[:, s, :], wih, preferred_element_type=jnp.float32)
        h = jnp.tanh(zx + bias
                     + jnp.dot(h, whh, preferred_element_type=jnp.float32))
        out_ref[:, s, :] = h.astype(out_ref.dtype)   # batch-first store
    h_scratch[...] = h                                # one carry writeback / block


def rnn_forward_pallas(x, params, h0=None, *, block_t=None, block_b=None,
                       slab_vmem_budget=4 << 20):
    """Single-layer batch_first nn.RNN(tanh) forward.

    x: (B, T, I); h0: None or (1, B, H) / (B, H).
    Returns (output (B, T, H), h_n (1, B, H)).
    """
    w_ih, w_hh, b_ih, b_hh = params          # (H, I), (H, H), (H,), (H,)
    B, T, I = x.shape
    H = w_hh.shape[0]
    dtype = x.dtype
    itemsize = jnp.dtype(dtype).itemsize

    if h0 is None:
        h0 = jnp.zeros((B, H), dtype)
    else:
        h0 = jnp.reshape(h0, (B, H)).astype(dtype)

    # Lane/sublane alignment: B -> multiple of 8, H -> multiple of 128.
    # Zero padding is exact: padded hidden lanes see zero weights/bias and
    # stay zero; padded batch rows / time steps are sliced off.
    Hp = _round_up(H, 128)
    if block_b is None:
        Bp = _round_up(B, 8)
        bb = Bp
    else:
        bb = max(8, _round_up(block_b, 8))
        Bp = _round_up(B, bb)

    # Time-block size from a VMEM slab budget (double-buffered x + out slabs).
    if block_t is None:
        per_step = 2 * bb * (I + Hp) * itemsize
        block_t = slab_vmem_budget // max(per_step, 1)
    bt = int(max(8, (min(block_t, 64, _round_up(T, 8)) // 8) * 8))
    Tp = _round_up(T, bt)

    # Padded operands (weights transposed once; biases pre-added).
    x_p = jnp.pad(x, ((0, Bp - B), (0, Tp - T), (0, 0)))
    h0_p = jnp.pad(h0, ((0, Bp - B), (0, Hp - H)))
    wih_t = jnp.pad(jnp.transpose(w_ih).astype(dtype), ((0, 0), (0, Hp - H)))
    whh_t = jnp.pad(jnp.transpose(w_hh).astype(dtype),
                    ((0, Hp - H), (0, Hp - H)))
    bias = jnp.pad((b_ih + b_hh).astype(dtype).reshape(1, H),
                   ((0, 0), (0, Hp - H)))
    # TODO(synk): optional bf16 operand cast (f32 accumulate) for large H.

    # Explicit scoped-VMEM limit from the actual accounting (+ headroom).
    resident = (I * Hp + Hp * Hp + Hp) * itemsize                 # weights+bias
    pipelined = 2 * (bb * bt * (I + Hp) + bb * Hp) * itemsize     # x/out/h0 x2
    scratch = bb * Hp * 4
    vmem_limit = int(min(max(2 * (resident + pipelined + scratch) + (2 << 20),
                             32 << 20), 64 << 20))

    grid = (Bp // bb, Tp // bt)
    out_p = pl.pallas_call(
        rnn_fused_kernel,
        out_shape=jax.ShapeDtypeStruct((Bp, Tp, Hp), dtype),
        grid_spec=pltpu.PrefetchScalarGridSpec(
            num_scalar_prefetch=0,
            grid=grid,
            in_specs=[
                pl.BlockSpec((bb, bt, I), lambda b, t: (b, t, 0)),    # x slab
                pl.BlockSpec(memory_space=pltpu.MemorySpace.VMEM),    # W_ih^T
                pl.BlockSpec(memory_space=pltpu.MemorySpace.VMEM),    # W_hh^T
                pl.BlockSpec(memory_space=pltpu.MemorySpace.VMEM),    # bias
                pl.BlockSpec((bb, Hp), lambda b, t: (b, 0)),          # h0
            ],
            out_specs=pl.BlockSpec((bb, bt, Hp), lambda b, t: (b, t, 0)),
            scratch_shapes=[pltpu.VMEM((bb, Hp), jnp.float32)],
        ),
        compiler_params=pltpu.CompilerParams(
            dimension_semantics=("parallel", "arbitrary"),  # batch ∥, time serial
            vmem_limit_bytes=vmem_limit),
    )(x_p, wih_t, whh_t, bias, h0_p)

    output = out_p[:B, :T, :H]          # already batch-first; no transpose pass
    h_n = out_p[:B, T - 1, :H][None]    # (1, B, H): final (unpadded) hidden state
    return output, h_n


class DecoderPallas:
    """Mirrors Decoder(input_size, hidden_size, cell_type='RNN', num_layers=1)."""

    def __init__(self, input_size, hidden_size, dropout=0.3, cell_type='RNN',
                 num_layers=1, key=jax.random.PRNGKey(0)):
        assert cell_type.upper() == 'RNN', "only the default RNN cell is implemented"
        assert num_layers == 1, "only num_layers=1 is implemented"
        # TODO(synk): LSTM / GRU / multi-layer variants of the module are not lowered.
        self.input_size = input_size
        self.hidden_size = hidden_size
        k = 1.0 / jnp.sqrt(hidden_size)          # PyTorch nn.RNN init: U(-k, k)
        k1, k2, k3, k4 = jax.random.split(key, 4)
        self.w_ih = jax.random.uniform(k1, (hidden_size, input_size), jnp.float32, -k, k)
        self.w_hh = jax.random.uniform(k2, (hidden_size, hidden_size), jnp.float32, -k, k)
        self.b_ih = jax.random.uniform(k3, (hidden_size,), jnp.float32, -k, k)
        self.b_hh = jax.random.uniform(k4, (hidden_size,), jnp.float32, -k, k)

    @property
    def params(self):
        return (self.w_ih, self.w_hh, self.b_ih, self.b_hh)

    def __call__(self, x, states):
        if states is None:
            return rnn_forward_pallas(x, self.params, None)
        elif isinstance(states, tuple):
            # LSTM branch of the original module (states = (h0, c0))
            raise NotImplementedError("LSTM cell not implemented")  # TODO(synk)
        else:
            return rnn_forward_pallas(x, self.params, states)


def rnn_forward_ref(x, params, h0):
    """Pure-JAX reference (lax.scan) for verification."""
    w_ih, w_hh, b_ih, b_hh = params
    B, T, I = x.shape
    H = w_hh.shape[0]
    if h0 is None:
        h0 = jnp.zeros((B, H), x.dtype)
    else:
        h0 = jnp.reshape(h0, (B, H)).astype(x.dtype)

    def step(h, x_t):
        h_new = jnp.tanh(
            jnp.dot(x_t, w_ih.T, precision=jax.lax.Precision.HIGHEST) + b_ih
            + jnp.dot(h, w_hh.T, precision=jax.lax.Precision.HIGHEST) + b_hh)
        return h_new, h_new

    h_T, ys = jax.lax.scan(step, h0, jnp.transpose(x, (1, 0, 2)))
    return jnp.transpose(ys, (1, 0, 2)), h_T[None]


if __name__ == "__main__":
    key = jax.random.PRNGKey(0)

    # --- case 1: aligned-ish small shapes (module default usage) ---
    B, T, INPUT, HIDDEN = 2, 8, 32, 32
    kx, kh, kp, k2x, k2h, k2p = jax.random.split(key, 6)
    x = jax.random.normal(kx, (B, T, INPUT), jnp.float32)
    h0 = jax.random.normal(kh, (1, B, HIDDEN), jnp.float32)
    dec = DecoderPallas(INPUT, HIDDEN, key=kp)

    out0, hn0 = dec(x, None)          # states=None branch
    out1, hn1 = dec(x, h0)            # states=h0 branch (vanilla RNN path)
    jax.block_until_ready((out0, hn0, out1, hn1))

    ref_out0, ref_hn0 = rnn_forward_ref(x, dec.params, None)
    ref_out1, ref_hn1 = rnn_forward_ref(x, dec.params, h0)
    assert out0.shape == (B, T, HIDDEN) and hn0.shape == (1, B, HIDDEN)
    assert jnp.allclose(out0, ref_out0, atol=1e-4, rtol=1e-4)
    assert jnp.allclose(hn0, ref_hn0, atol=1e-4, rtol=1e-4)
    assert jnp.allclose(out1, ref_out1, atol=1e-4, rtol=1e-4)
    assert jnp.allclose(hn1, ref_hn1, atol=1e-4, rtol=1e-4)

    # --- case 2: unaligned B/T/H exercises the padding + time-block padding ---
    B2, T2, I2, H2 = 3, 13, 24, 40
    x2 = jax.random.normal(k2x, (B2, T2, I2), jnp.float32)
    h02 = jax.random.normal(k2h, (1, B2, H2), jnp.float32)
    dec2 = DecoderPallas(I2, H2, key=k2p)
    out2, hn2 = dec2(x2, h02)
    jax.block_until_ready((out2, hn2))
    ref_out2, ref_hn2 = rnn_forward_ref(x2, dec2.params, h02)
    assert out2.shape == (B2, T2, H2) and hn2.shape == (1, B2, H2)
    assert jnp.allclose(out2, ref_out2, atol=1e-4, rtol=1e-4)
    assert jnp.allclose(hn2, ref_hn2, atol=1e-4, rtol=1e-4)

    print("KERNEL_OK")
</pallas_src>

<mosaic_0001>
module attributes {stable_mosaic.version = 11 : i64} {
  func.func @rnn_fused_kernel(%arg0: i32, %arg1: i32, %arg2: memref<8x8x32xf32, #tpu.memory_space<vmem>>, %arg3: memref<32x128xf32, #tpu.memory_space<vmem>>, %arg4: memref<128x128xf32, #tpu.memory_space<vmem>>, %arg5: memref<1x128xf32, #tpu.memory_space<vmem>>, %arg6: memref<8x128xf32, #tpu.memory_space<vmem>>, %arg7: memref<8x8x128xf32, #tpu.memory_space<vmem>>, %arg8: memref<8x128xf32, #tpu.memory_space<vmem>>) attributes {dimension_semantics = [#tpu.dimension_semantics<parallel>, #tpu.dimension_semantics<arbitrary>], iteration_bounds = array<i64: 1, 1>, scalar_prefetch = 0 : i64, scratch_operands = 1 : i64, tpu.core_type = #tpu.core_type<tc>, window_params = [{transform_indices = @transform_0, window_bounds = array<i64: 8, 8, 32>}, {pipeline_mode = #tpu.pipeline_mode<synchronous>, transform_indices = @transform_1, window_bounds = array<i64: 32, 128>}, {pipeline_mode = #tpu.pipeline_mode<synchronous>, transform_indices = @transform_2, window_bounds = array<i64: 128, 128>}, {pipeline_mode = #tpu.pipeline_mode<synchronous>, transform_indices = @transform_3, window_bounds = array<i64: 1, 128>}, {transform_indices = @transform_4, window_bounds = array<i64: 8, 128>}, {transform_indices = @transform_5, window_bounds = array<i64: 8, 8, 128>}]} {
    %c0_i32 = arith.constant 0 : i32
    %0 = arith.cmpi eq, %arg1, %c0_i32 : i32
    %1 = arith.extui %0 : i1 to i32
    %c0_i32_0 = arith.constant 0 : i32
    %2 = arith.cmpi ne, %1, %c0_i32_0 : i32
    scf.if %2 {
      %c0_66 = arith.constant 0 : index
      %c0_67 = arith.constant 0 : index
      %90 = vector.load %arg6[%c0_66, %c0_67] : memref<8x128xf32, #tpu.memory_space<vmem>>, vector<8x128xf32>
      %c0_68 = arith.constant 0 : index
      %c0_69 = arith.constant 0 : index
      %91 = vector.load %arg8[%c0_68, %c0_69] : memref<8x128xf32, #tpu.memory_space<vmem>>, vector<8x128xf32>
      tpu.vector_store %arg8[%c0_68, %c0_69], %90 {strides = array<i32>} : memref<8x128xf32, #tpu.memory_space<vmem>>, vector<8x128xf32>,
    } else {
    }
    %c0 = arith.constant 0 : index
    %c0_1 = arith.constant 0 : index
    %3 = vector.load %arg3[%c0, %c0_1] : memref<32x128xf32, #tpu.memory_space<vmem>>, vector<32x128xf32>
    %c0_2 = arith.constant 0 : index
    %c0_3 = arith.constant 0 : index
    %4 = vector.load %arg4[%c0_2, %c0_3] : memref<128x128xf32, #tpu.memory_space<vmem>>, vector<128x128xf32>
    %c0_4 = arith.constant 0 : index
    %c0_5 = arith.constant 0 : index
    %5 = vector.load %arg5[%c0_4, %c0_5] : memref<1x128xf32, #tpu.memory_space<vmem>>, vector<1x128xf32>
    %6 = vector.shape_cast %5 : vector<1x128xf32> to vector<1x128xf32>
    %7 = vector.broadcast %6 : vector<1x128xf32> to vector<8x128xf32>
    %c0_6 = arith.constant 0 : index
    %c0_7 = arith.constant 0 : index
    %8 = vector.load %arg8[%c0_6, %c0_7] : memref<8x128xf32, #tpu.memory_space<vmem>>, vector<8x128xf32>
    %c0_8 = arith.constant 0 : index
    %c0_9 = arith.constant 0 : index
    %c0_10 = arith.constant 0 : index
    %9 = vector.load %arg2[%c0_8, %c0_9, %c0_10] : memref<8x8x32xf32, #tpu.memory_space<vmem>>, vector<8x1x32xf32>
    %10 = vector.shape_cast %9 : vector<8x1x32xf32> to vector<8x32xf32>
    %cst = arith.constant dense<0.000000e+00> : vector<8x128xf32>
    %11 = tpu.matmul %10, %3, %cst {dimension_numbers = #tpu.dot_dimension_numbers<[1], [0], [0], [1], [0, 0, 1, 1], [], []>} : vector<8x32xf32>, vector<32x128xf32>, vector<8x128xf32> -> vector<8x128xf32>
    %12 = arith.addf %11, %7 : vector<8x128xf32>
    %cst_11 = arith.constant dense<0.000000e+00> : vector<8x128xf32>
    %13 = tpu.matmul %8, %4, %cst_11 {dimension_numbers = #tpu.dot_dimension_numbers<[1], [0], [0], [1], [0, 0, 1, 1], [], []>} : vector<8x128xf32>, vector<128x128xf32>, vector<8x128xf32> -> vector<8x128xf32>
    %14 = arith.addf %12, %13 : vector<8x128xf32>
    %15 = math.tanh %14 : vector<8x128xf32>
    %c0_12 = arith.constant 0 : index
    %c0_13 = arith.constant 0 : index
    %c0_14 = arith.constant 0 : index
    %16 = vector.load %arg7[%c0_12, %c0_13, %c0_14] : memref<8x8x128xf32, #tpu.memory_space<vmem>>, vector<8x1x128xf32>
    %17 = vector.shape_cast %16 : vector<8x1x128xf32> to vector<8x128xf32>
    %18 = vector.shape_cast %15 : vector<8x128xf32> to vector<8x1x128xf32>
    tpu.vector_store %arg7[%c0_12, %c0_13, %c0_14], %18 {strides = array<i32>} : memref<8x8x128xf32, #tpu.memory_space<vmem>>, vector<8x1x128xf32>,
    %c0_15 = arith.constant 0 : index
    %c1 = arith.constant 1 : index
    %c0_16 = arith.constant 0 : index
    %19 = vector.load %arg2[%c0_15, %c1, %c0_16] : memref<8x8x32xf32, #tpu.memory_space<vmem>>, vector<8x1x32xf32>
    %20 = vector.shape_cast %19 : vector<8x1x32xf32> to vector<8x32xf32>
    %cst_17 = arith.constant dense<0.000000e+00> : vector<8x128xf32>
    %21 = tpu.matmul %20, %3, %cst_17 {dimension_numbers = #tpu.dot_dimension_numbers<[1], [0], [0], [1], [0, 0, 1, 1], [], []>} : vector<8x32xf32>, vector<32x128xf32>, vector<8x128xf32> -> vector<8x128xf32>
    %22 = arith.addf %21, %7 : vector<8x128xf32>
    %cst_18 = arith.constant dense<0.000000e+00> : vector<8x128xf32>
    %23 = tpu.matmul %15, %4, %cst_18 {dimension_numbers = #tpu.dot_dimension_numbers<[1], [0], [0], [1], [0, 0, 1, 1], [], []>} : vector<8x128xf32>, vector<128x128xf32>, vector<8x128xf32> -> vector<8x128xf32>
    %24 = arith.addf %22, %23 : vector<8x128xf32>
    %25 = math.tanh %24 : vector<8x128xf32>
    %c0_19 = arith.constant 0 : index
    %c1_20 = arith.constant 1 : index
    %c0_21 = arith.constant 0 : index
    %26 = vector.load %arg7[%c0_19, %c1_20, %c0_21] : memref<8x8x128xf32, #tpu.memory_space<vmem>>, vector<8x1x128xf32>
    %27 = vector.shape_cast %26 : vector<8x1x128xf32> to vector<8x128xf32>
    %28 = vector.shape_cast %25 : vector<8x128xf32> to vector<8x1x128xf32>
    tpu.vector_store %arg7[%c0_19, %c1_20, %c0_21], %28 {strides = array<i32>} : memref<8x8x128xf32, #tpu.memory_space<vmem>>, vector<8x1x128xf32>,
    %c0_22 = arith.constant 0 : index
    %c2 = arith.constant 2 : index
    %c0_23 = arith.constant 0 : index
    %29 = vector.load %arg2[%c0_22, %c2, %c0_23] : memref<8x8x32xf32, #tpu.memory_space<vmem>>, vector<8x1x32xf32>
    %30 = vector.shape_cast %29 : vector<8x1x32xf32> to vector<8x32xf32>
    %cst_24 = arith.constant dense<0.000000e+00> : vector<8x128xf32>
    %31 = tpu.matmul %30, %3, %cst_24 {dimension_numbers = #tpu.dot_dimension_numbers<[1], [0], [0], [1], [0, 0, 1, 1], [], []>} : vector<8x32xf32>, vector<32x128xf32>, vector<8x128xf32> -> vector<8x128xf32>
    %32 = arith.addf %31, %7 : vector<8x128xf32>
    %cst_25 = arith.constant dense<0.000000e+00> : vector<8x128xf32>
    %33 = tpu.matmul %25, %4, %cst_25 {dimension_numbers = #tpu.dot_dimension_numbers<[1], [0], [0], [1], [0, 0, 1, 1], [], []>} : vector<8x128xf32>, vector<128x128xf32>, vector<8x128xf32> -> vector<8x128xf32>
    %34 = arith.addf %32, %33 : vector<8x128xf32>
    %35 = math.tanh %34 : vector<8x128xf32>
    %c0_26 = arith.constant 0 : index
    %c2_27 = arith.constant 2 : index
    %c0_28 = arith.constant 0 : index
    %36 = vector.load %arg7[%c0_26, %c2_27, %c0_28] : memref<8x8x128xf32, #tpu.memory_space<vmem>>, vector<8x1x128xf32>
    %37 = vector.shape_cast %36 : vector<8x1x128xf32> to vector<8x128xf32>
    %38 = vector.shape_cast %35 : vector<8x128xf32> to vector<8x1x128xf32>
    tpu.vector_store %arg7[%c0_26, %c2_27, %c0_28], %38 {strides = array<i32>} : memref<8x8x128xf32, #tpu.memory_space<vmem>>, vector<8x1x128xf32>,
    %c0_29 = arith.constant 0 : index
    %c3 = arith.constant 3 : index
    %c0_30 = arith.constant 0 : index
    %39 = vector.load %arg2[%c0_29, %c3, %c0_30] : memref<8x8x32xf32, #tpu.memory_space<vmem>>, vector<8x1x32xf32>
    %40 = vector.shape_cast %39 : vector<8x1x32xf32> to vector<8x32xf32>
    %cst_31 = arith.constant dense<0.000000e+00> : vector<8x128xf32>
    %41 = tpu.matmul %40, %3, %cst_31 {dimension_numbers = #tpu.dot_dimension_numbers<[1], [0], [0], [1], [0, 0, 1, 1], [], []>} : vector<8x32xf32>, vector<32x128xf32>, vector<8x128xf32> -> vector<8x128xf32>
    %42 = arith.addf %41, %7 : vector<8x128xf32>
    %cst_32 = arith.constant dense<0.000000e+00> : vector<8x128xf32>
    %43 = tpu.matmul %35, %4, %cst_32 {dimension_numbers = #tpu.dot_dimension_numbers<[1], [0], [0], [1], [0, 0, 1, 1], [], []>} : vector<8x128xf32>, vector<128x128xf32>, vector<8x128xf32> -> vector<8x128xf32>
    %44 = arith.addf %42, %43 : vector<8x128xf32>
    %45 = math.tanh %44 : vector<8x128xf32>
    %c0_33 = arith.constant 0 : index
    %c3_34 = arith.constant 3 : index
    %c0_35 = arith.constant 0 : index
    %46 = vector.load %arg7[%c0_33, %c3_34, %c0_35] : memref<8x8x128xf32, #tpu.memory_space<vmem>>, vector<8x1x128xf32>
    %47 = vector.shape_cast %46 : vector<8x1x128xf32> to vector<8x128xf32>
    %48 = vector.shape_cast %45 : vector<8x128xf32> to vector<8x1x128xf32>
    tpu.vector_store %arg7[%c0_33, %c3_34, %c0_35], %48 {strides = array<i32>} : memref<8x8x128xf32, #tpu.memory_space<vmem>>, vector<8x1x128xf32>,
    %c0_36 = arith.constant 0 : index
    %c4 = arith.constant 4 : index
    %c0_37 = arith.constant 0 : index
    %49 = vector.load %arg2[%c0_36, %c4, %c0_37] : memref<8x8x32xf32, #tpu.memory_space<vmem>>, vector<8x1x32xf32>
    %50 = vector.shape_cast %49 : vector<8x1x32xf32> to vector<8x32xf32>
    %cst_38 = arith.constant dense<0.000000e+00> : vector<8x128xf32>
    %51 = tpu.matmul %50, %3, %cst_38 {dimension_numbers = #tpu.dot_dimension_numbers<[1], [0], [0], [1], [0, 0, 1, 1], [], []>} : vector<8x32xf32>, vector<32x128xf32>, vector<8x128xf32> -> vector<8x128xf32>
    %52 = arith.addf %51, %7 : vector<8x128xf32>
    %cst_39 = arith.constant dense<0.000000e+00> : vector<8x128xf32>
    %53 = tpu.matmul %45, %4, %cst_39 {dimension_numbers = #tpu.dot_dimension_numbers<[1], [0], [0], [1], [0, 0, 1, 1], [], []>} : vector<8x128xf32>, vector<128x128xf32>, vector<8x128xf32> -> vector<8x128xf32>
    %54 = arith.addf %52, %53 : vector<8x128xf32>
    %55 = math.tanh %54 : vector<8x128xf32>
    %c0_40 = arith.constant 0 : index
    %c4_41 = arith.constant 4 : index
    %c0_42 = arith.constant 0 : index
    %56 = vector.load %arg7[%c0_40, %c4_41, %c0_42] : memref<8x8x128xf32, #tpu.memory_space<vmem>>, vector<8x1x128xf32>
    %57 = vector.shape_cast %56 : vector<8x1x128xf32> to vector<8x128xf32>
    %58 = vector.shape_cast %55 : vector<8x128xf32> to vector<8x1x128xf32>
    tpu.vector_store %arg7[%c0_40, %c4_41, %c0_42], %58 {strides = array<i32>} : memref<8x8x128xf32, #tpu.memory_space<vmem>>, vector<8x1x128xf32>,
    %c0_43 = arith.constant 0 : index
    %c5 = arith.constant 5 : index
    %c0_44 = arith.constant 0 : index
    %59 = vector.load %arg2[%c0_43, %c5, %c0_44] : memref<8x8x32xf32, #tpu.memory_space<vmem>>, vector<8x1x32xf32>
    %60 = vector.shape_cast %59 : vector<8x1x32xf32> to vector<8x32xf32>
    %cst_45 = arith.constant dense<0.000000e+00> : vector<8x128xf32>
    %61 = tpu.matmul %60, %3, %cst_45 {dimension_numbers = #tpu.dot_dimension_numbers<[1], [0], [0], [1], [0, 0, 1, 1], [], []>} : vector<8x32xf32>, vector<32x128xf32>, vector<8x128xf32> -> vector<8x128xf32>
    %62 = arith.addf %61, %7 : vector<8x128xf32>
    %cst_46 = arith.constant dense<0.000000e+00> : vector<8x128xf32>
    %63 = tpu.matmul %55, %4, %cst_46 {dimension_numbers = #tpu.dot_dimension_numbers<[1], [0], [0], [1], [0, 0, 1, 1], [], []>} : vector<8x128xf32>, vector<128x128xf32>, vector<8x128xf32> -> vector<8x128xf32>
    %64 = arith.addf %62, %63 : vector<8x128xf32>
    %65 = math.tanh %64 : vector<8x128xf32>
    %c0_47 = arith.constant 0 : index
    %c5_48 = arith.constant 5 : index
    %c0_49 = arith.constant 0 : index
    %66 = vector.load %arg7[%c0_47, %c5_48, %c0_49] : memref<8x8x128xf32, #tpu.memory_space<vmem>>, vector<8x1x128xf32>
    %67 = vector.shape_cast %66 : vector<8x1x128xf32> to vector<8x128xf32>
    %68 = vector.shape_cast %65 : vector<8x128xf32> to vector<8x1x128xf32>
    tpu.vector_store %arg7[%c0_47, %c5_48, %c0_49], %68 {strides = array<i32>} : memref<8x8x128xf32, #tpu.memory_space<vmem>>, vector<8x1x128xf32>,
    %c0_50 = arith.constant 0 : index
    %c6 = arith.constant 6 : index
    %c0_51 = arith.constant 0 : index
    %69 = vector.load %arg2[%c0_50, %c6, %c0_51] : memref<8x8x32xf32, #tpu.memory_space<vmem>>, vector<8x1x32xf32>
    %70 = vector.shape_cast %69 : vector<8x1x32xf32> to vector<8x32xf32>
    %cst_52 = arith.constant dense<0.000000e+00> : vector<8x128xf32>
    %71 = tpu.matmul %70, %3, %cst_52 {dimension_numbers = #tpu.dot_dimension_numbers<[1], [0], [0], [1], [0, 0, 1, 1], [], []>} : vector<8x32xf32>, vector<32x128xf32>, vector<8x128xf32> -> vector<8x128xf32>
    %72 = arith.addf %71, %7 : vector<8x128xf32>
    %cst_53 = arith.constant dense<0.000000e+00> : vector<8x128xf32>
    %73 = tpu.matmul %65, %4, %cst_53 {dimension_numbers = #tpu.dot_dimension_numbers<[1], [0], [0], [1], [0, 0, 1, 1], [], []>} : vector<8x128xf32>, vector<128x128xf32>, vector<8x128xf32> -> vector<8x128xf32>
    %74 = arith.addf %72, %73 : vector<8x128xf32>
    %75 = math.tanh %74 : vector<8x128xf32>
    %c0_54 = arith.constant 0 : index
    %c6_55 = arith.constant 6 : index
    %c0_56 = arith.constant 0 : index
    %76 = vector.load %arg7[%c0_54, %c6_55, %c0_56] : memref<8x8x128xf32, #tpu.memory_space<vmem>>, vector<8x1x128xf32>
    %77 = vector.shape_cast %76 : vector<8x1x128xf32> to vector<8x128xf32>
    %78 = vector.shape_cast %75 : vector<8x128xf32> to vector<8x1x128xf32>
    tpu.vector_store %arg7[%c0_54, %c6_55, %c0_56], %78 {strides = array<i32>} : memref<8x8x128xf32, #tpu.memory_space<vmem>>, vector<8x1x128xf32>,
    %c0_57 = arith.constant 0 : index
    %c7 = arith.constant 7 : index
    %c0_58 = arith.constant 0 : index
    %79 = vector.load %arg2[%c0_57, %c7, %c0_58] : memref<8x8x32xf32, #tpu.memory_space<vmem>>, vector<8x1x32xf32>
    %80 = vector.shape_cast %79 : vector<8x1x32xf32> to vector<8x32xf32>
    %cst_59 = arith.constant dense<0.000000e+00> : vector<8x128xf32>
    %81 = tpu.matmul %80, %3, %cst_59 {dimension_numbers = #tpu.dot_dimension_numbers<[1], [0], [0], [1], [0, 0, 1, 1], [], []>} : vector<8x32xf32>, vector<32x128xf32>, vector<8x128xf32> -> vector<8x128xf32>
    %82 = arith.addf %81, %7 : vector<8x128xf32>
    %cst_60 = arith.constant dense<0.000000e+00> : vector<8x128xf32>
    %83 = tpu.matmul %75, %4, %cst_60 {dimension_numbers = #tpu.dot_dimension_numbers<[1], [0], [0], [1], [0, 0, 1, 1], [], []>} : vector<8x128xf32>, vector<128x128xf32>, vector<8x128xf32> -> vector<8x128xf32>
    %84 = arith.addf %82, %83 : vector<8x128xf32>
    %85 = math.tanh %84 : vector<8x128xf32>
    %c0_61 = arith.constant 0 : index
    %c7_62 = arith.constant 7 : index
    %c0_63 = arith.constant 0 : index
    %86 = vector.load %arg7[%c0_61, %c7_62, %c0_63] : memref<8x8x128xf32, #tpu.memory_space<vmem>>, vector<8x1x128xf32>
    %87 = vector.shape_cast %86 : vector<8x1x128xf32> to vector<8x128xf32>
    %88 = vector.shape_cast %85 : vector<8x128xf32> to vector<8x1x128xf32>
    tpu.vector_store %arg7[%c0_61, %c7_62, %c0_63], %88 {strides = array<i32>} : memref<8x8x128xf32, #tpu.memory_space<vmem>>, vector<8x1x128xf32>,
    %c0_64 = arith.constant 0 : index
    %c0_65 = arith.constant 0 : index
    %89 = vector.load %arg8[%c0_64, %c0_65] : memref<8x128xf32, #tpu.memory_space<vmem>>, vector<8x128xf32>
    tpu.vector_store %arg8[%c0_64, %c0_65], %85 {strides = array<i32>} : memref<8x128xf32, #tpu.memory_space<vmem>>, vector<8x128xf32>,
    return
  }
  func.func @transform_0(%arg0: i32, %arg1: i32) -> (i32, i32, i32) {
    %c0_i32 = arith.constant 0 : i32
    %c0_i32_0 = arith.constant 0 : i32
    return %arg0, %arg1, %c0_i32 : i32, i32, i32
  }
  func.func @transform_1(%arg0: i32, %arg1: i32) -> (i32, i32) {
    %c0_i32 = arith.constant 0 : i32
    %c0_i32_0 = arith.constant 0 : i32
    %c0_i32_1 = arith.constant 0 : i32
    return %c0_i32, %c0_i32_0 : i32, i32
  }
  func.func @transform_2(%arg0: i32, %arg1: i32) -> (i32, i32) {
    %c0_i32 = arith.constant 0 : i32
    %c0_i32_0 = arith.constant 0 : i32
    %c0_i32_1 = arith.constant 0 : i32
    return %c0_i32, %c0_i32_0 : i32, i32
  }
  func.func @transform_3(%arg0: i32, %arg1: i32) -> (i32, i32) {
    %c0_i32 = arith.constant 0 : i32
    %c0_i32_0 = arith.constant 0 : i32
    %c0_i32_1 = arith.constant 0 : i32
    return %c0_i32, %c0_i32_0 : i32, i32
  }
  func.func @transform_4(%arg0: i32, %arg1: i32) -> (i32, i32) {
    %c0_i32 = arith.constant 0 : i32
    %c0_i32_0 = arith.constant 0 : i32
    return %arg0, %c0_i32 : i32, i32
  }
  func.func @transform_5(%arg0: i32, %arg1: i32) -> (i32, i32, i32) {
    %c0_i32 = arith.constant 0 : i32
    %c0_i32_0 = arith.constant 0 : i32
    return %arg0, %arg1, %c0_i32 : i32, i32, i32
  }
}

</mosaic_0001>

<bundles_post_ra>
// kernel: tpu_custom_call.1
= control target key start
LH: loop header
LB: loop body
LE: loop exit
PB: predicated region body
PF: predicated region fallthrough
CT: control target
= control target key end

     0   :  { %10 = vsyncpa [#allocation4], 0  ;;  %s1420_s0 = inlined_call_operand.hbm [shape: f32[8,8,32], index: 0, kind: input, shape index: {}]   ;;  %s1421_s1 = inlined_call_operand.hbm [shape: f32[32,128], index: 1, kind: input, shape index: {}]   ;;  %s1422_s2 = inlined_call_operand.hbm [shape: f32[128,128], index: 2, kind: input, shape index: {}]   ;;  %s1423_s3 = inlined_call_operand.vmem [shape: f32[1,128], index: 3, kind: input, shape index: {}]   ;;  %s1424_s4 = inlined_call_operand.hbm [shape: f32[8,128], index: 4, kind: input, shape index: {}]   ;;  %s1425_s5 = inlined_call_operand.hbm [shape: f32[8,8,128], index: 5, kind: output, shape index: {}]  }
   0x1   :  { %11 = vsyncpa [#allocation7], 0 }
   0x2   :  { %12 = vsyncpa [#allocation10], 0 }
   0x3   :  { %13 = vsyncpa [#allocation5], 0  ;;  %s31_s20 = sshll.u32 %s1421_s1, 4  ;;  %s1079_s21 = smov [#allocation6]   ;;  %s32_s20 = int_to_ptr.hbm [resolvable:$true] %s31_s20 }
   0x4   :  { %s33_s22 = sshll.u32 %s1079_s21, 4  ;;  %s18_s25 = sshll.u32 %s1420_s0, 4  ;;  %s34_s22 = int_to_ptr.vmem [resolvable:$true] %s33_s22  ;;  %s19_s25 = int_to_ptr.hbm [resolvable:$true] %s18_s25 }
   0x5   :  { %s1080_s26 = smov 128   ;;  %s1081_s27 = smov 8  }
   0x6   :  { %39 = dma.hbm_to_vmem [thread:$0]  %s32_s20, 512, %s34_s22, [#allocation7], %s1080_s26, %s1080_s26, %s1081_s27  }
   0x7   :  { %s1082_s28 = smov [#allocation3]   ;;  %s44_s1 = sshll.u32 %s1422_s2, 4  ;;  %s45_s1 = int_to_ptr.hbm [resolvable:$true] %s44_s1 }
   0x8   :  { %s20_s29 = sshll.u32 %s1082_s28, 4  ;;  %s60_s8 = sshll.u32 %s1424_s4, 4  ;;  %s21_s29 = int_to_ptr.vmem [resolvable:$true] %s20_s29  ;;  %s61_s8 = int_to_ptr.hbm [resolvable:$true] %s60_s8 }
   0x9   :  { %26 = dma.hbm_to_vmem [thread:$0]  %s19_s25, 1024, %s21_s29, [#allocation4], %s1080_s26, %s1080_s26, %s1081_s27  }
   0xa   :  { %s1083_s9 = smov [#allocation8]   ;;  %s1084_s11 = smov [#allocation9]  }
   0xb   :  { %s46_s10 = sshll.u32 %s1083_s9, 4  ;;  %s62_s2 = sshll.u32 %s1084_s11, 4  ;;  %s47_s10 = int_to_ptr.vmem [resolvable:$true] %s46_s10  ;;  %s63_s2 = int_to_ptr.vmem [resolvable:$true] %s62_s2 }
   0xc   :  { %52 = dma.hbm_to_vmem [thread:$0]  %s45_s1, 2048, %s47_s10, [#allocation7], %s1080_s26, %s1080_s26, %s1081_s27  }
   0xd   :  { %65 = dma.hbm_to_vmem [thread:$0]  %s61_s8, 128, %s63_s2, [#allocation10]  }
   0xe   :  { %1071 = dma.done.wait [#allocation4], 1024  }
   0xf   :  { %1072 = vsyncadd [#allocation4], 4294966272 }
  0x10   :  { %1073 = dma.done.wait [#allocation7], 2560  }
  0x11   :  { %1074 = vsyncadd [#allocation7], 4294964736 }
  0x12   :  { %1075 = dma.done.wait [#allocation10], 128  }
  0x13   :  { %1076 = vsyncadd [#allocation10], 4294967168  ;;  %v1137_v0 = vld [vmem:[#allocation8 + $0x78] sm:$0xff]  ;;  %v1139_v1 = vld [vmem:[#allocation8 + $0x70] sm:$0xff]  ;;  %vm130_vm0 = vcmask 1041409   ;;  %vm133_vm1 = vcmask 1042434  }
  0x14   :  { %173 = vmatpush.msra.mxu1 %v1137_v0  ;;  %270 = vmatpush.msra.mxu3 %v1137_v0  ;;  %v1143_v2 = vld [vmem:[#allocation8 + $0x68] sm:$0xff]  ;;  %v1145_v3 = vld [vmem:[#allocation6 + $0x18] sm:$0xff]  ;;  %v1149_v4 = vld [vmem:[#allocation6 + $0x10] sm:$0xff]  ;;  %vm136_vm2 = vcmask 1043459   ;;  %vm139_vm3 = vcmask 1044484   ;;  %vm142_vm4 = vcmask 1045509  }
  0x15   :  { %165 = vmatpush.msra.mxu2 %v1145_v3  ;;  %v1151_v5 = vld [vmem:[#allocation8 + $0x60] sm:$0xff]  ;;  %v1153_v6 = vld [vmem:[#allocation6 + $0x8] sm:$0xff]  ;;  %359 = vmatpush.msra.mxu0 %v1145_v3  ;;  %v1158_v7 = vld [vmem:[#allocation8 + $0x58] sm:$0xff]  ;;  %vm145_vm5 = vcmask 1046534   ;;  %vm148_vm6 = vcmask 1047559   ;;  %vm150_vm7 = vcmask 261120  }
  0x16   :  { %174 = vmatpush.msra.mxu1 %v1139_v1  ;;  %271 = vmatpush.msra.mxu3 %v1139_v1  ;;  %v1161_v8 = vld [vmem:[#allocation6] sm:$0xff]  ;;  %v114_v9 = vld [vmem:[#allocation3 + $0x8] sm:$0x1]  ;;  %v115_v10 = vld [vmem:[#allocation3 + $0x10] sm:$0x1]  ;;  %s904_s16 = sshll.u32 %s1425_s5, 4  ;;  %s905_s16 = int_to_ptr.hbm [resolvable:$true] %s904_s16 }
  0x17   :  { %166 = vmatpush.msra.mxu2 %v1149_v4  ;;  %v116_v11 = vld [vmem:[#allocation3 + $0x18] sm:$0x1]  ;;  %v117_v12 = vld [vmem:[#allocation3 + $0x20] sm:$0x1]  ;;  %360 = vmatpush.msra.mxu0 %v1149_v4  ;;  %v118_v14 = vld [vmem:[#allocation3 + $0x28] sm:$0x1] }
  0x18   :  { %175 = vmatpush.msra.mxu1 %v1143_v2  ;;  %272 = vmatpush.msra.mxu3 %v1143_v2  ;;  %v113_v13 = vld [vmem:[#allocation3] sm:$0x1]  ;;  %v1167_v15 = vld [vmem:[#allocation8 + $0x50] sm:$0xff]  ;;  %v129_v17 = vrot.slane %v114_v9, 7  ;;  %v132_v18 = vrot.slane %v115_v10, 6  ;;  %v135_v19 = vrot.slane %v116_v11, 5 }
  0x19   :  { %167 = vmatpush.msra.mxu2 %v1153_v6  ;;  %v119_v16 = vld [vmem:[#allocation3 + $0x30] sm:$0x1]  ;;  %361 = vmatpush.msra.mxu0 %v1153_v6  ;;  %v120_v20 = vld [vmem:[#allocation3 + $0x38] sm:$0x1]  ;;  %v138_v21 = vrot.slane %v117_v12, 4  ;;  %v1173_v22 = vld [vmem:[#allocation8 + $0x48] sm:$0xff] }
  0x1a   :  { %176 = vmatpush.msra.mxu1 %v1151_v5  ;;  %273 = vmatpush.msra.mxu3 %v1151_v5  ;;  %v131_v23 = vsel %vm130_vm0, %v129_v17, %v113_v13  ;;  %v141_v24 = vrot.slane %v118_v14, 3  ;;  %v144_v26 = vrot.slane %v119_v16, 2  ;;  %v1181_v27 = vld [vmem:[#allocation8 + $0x40] sm:$0xff]  ;;  %v147_v29 = vrot.slane %v120_v20, 1  ;;  %v1189_v31 = vld [vmem:[#allocation8 + $0x38] sm:$0xff]  ;;  %v1197_v34 = vld [vmem:[#allocation8 + $0x30] sm:$0xff] }
  0x1b   :  { %168 = vmatpush.msra.mxu2 %v1161_v8  ;;  %v134_v25 = vsel %vm133_vm1, %v132_v18, %v131_v23  ;;  %362 = vmatpush.msra.mxu0 %v1161_v8  ;;  %v1204_v36 = vld [vmem:[#allocation8 + $0x28] sm:$0xff]  ;;  %v1210_v37 = vld [vmem:[#allocation8 + $0x20] sm:$0xff]  ;;  %v1216_v38 = vld [vmem:[#allocation8 + $0x18] sm:$0xff] }
  0x1c   :  { %177 = vmatpush.msra.mxu1 %v1158_v7  ;;  %274 = vmatpush.msra.mxu3 %v1158_v7  ;;  %v137_v28 = vsel %vm136_vm2, %v135_v19, %v134_v25  ;;  %v1221_v39 = vld [vmem:[#allocation8 + $0x10] sm:$0xff]  ;;  %v1226_v40 = vld [vmem:[#allocation8 + $0x8] sm:$0xff]  ;;  %v1231_v41 = vld [vmem:[#allocation8] sm:$0xff] }
  0x1d   :  { %262 = vmatpush.msrb.mxu2 %v1145_v3  ;;  %v140_v30 = vsel %vm139_vm3, %v138_v21, %v137_v28  ;;  %456 = vmatpush.msrb.mxu0 %v1145_v3  ;;  %v86_v42 = vld [vmem:[#allocation9] sm:$0xff]  ;;  %v219_v43 = vld [vmem:[#allocation3 + $0x9] sm:$0x1]  ;;  %v220_v44 = vld [vmem:[#allocation3 + $0x11] sm:$0x1] }
  0x1e   :  { %178 = vmatpush.msra.mxu1 %v1167_v15  ;;  %275 = vmatpush.msra.mxu3 %v1167_v15  ;;  %v143_v32 = vsel %vm142_vm4, %v141_v24, %v140_v30  ;;  %v234_v45 = vrot.slane %v219_v43, 7  ;;  %v218_v46 = vld [vmem:[#allocation3 + $0x1] sm:$0x1]  ;;  %v221_v47 = vld [vmem:[#allocation3 + $0x19] sm:$0x1]  ;;  %v236_v48 = vrot.slane %v220_v44, 6 }
  0x1f   :  { %263 = vmatpush.msrb.mxu2 %v1149_v4  ;;  %v146_v33 = vsel %vm145_vm5, %v144_v26, %v143_v32  ;;  %457 = vmatpush.msrb.mxu0 %v1149_v4  ;;  %v222_v49 = vld [vmem:[#allocation3 + $0x21] sm:$0x1]  ;;  %v238_v51 = vrot.slane %v221_v47, 5  ;;  %v223_v52 = vld [vmem:[#allocation3 + $0x29] sm:$0x1] }
  0x20   :  { %179 = vmatpush.msra.mxu1 %v1173_v22  ;;  %276 = vmatpush.msra.mxu3 %v1173_v22  ;;  %v149_v35 = vsel %vm148_vm6, %v147_v29, %v146_v33  ;;  %v235_v50 = vsel %vm130_vm0, %v234_v45, %v218_v46  ;;  %v240_v54 = vrot.slane %v222_v49, 4  ;;  %v224_v55 = vld [vmem:[#allocation3 + $0x31] sm:$0x1]  ;;  %v242_v57 = vrot.slane %v223_v52, 3  ;;  %v225_v58 = vld [vmem:[#allocation3 + $0x39] sm:$0x1] }
  0x21   :  { %264 = vmatpush.msrb.mxu2 %v1153_v6  ;;  %458 = vmatpush.msrb.mxu0 %v1153_v6  ;;  %v237_v53 = vsel %vm133_vm1, %v236_v48, %v235_v50  ;;  %v244_v60 = vrot.slane %v224_v55, 2  ;;  %v246_v62 = vrot.slane %v225_v58, 1  ;;  %v1277_v10 = vld [vmem:[%s1423_s3] ss:$0 sm:$0xff]  ;;  %v316_v25 = vld [vmem:[#allocation3 + $0xa] sm:$0x1] }
  0x22   :  { %180 = vmatpush.msra.mxu1 %v1181_v27  ;;  %277 = vmatpush.msra.mxu3 %v1181_v27  ;;  %v239_v56 = vsel %vm136_vm2, %v238_v51, %v237_v53  ;;  %v317_v26 = vld [vmem:[#allocation3 + $0x12] sm:$0x1]  ;;  %v331_v28 = vrot.slane %v316_v25, 7  ;;  %v315_v29 = vld [vmem:[#allocation3 + $0x2] sm:$0x1]  ;;  %s1085_s3 = smov [#allocation11]  }
  0x23   :  { %265 = vmatpush.msrb.mxu2 %v1161_v8  ;;  %459 = vmatpush.msrb.mxu0 %v1161_v8  ;;  %v241_v59 = vsel %vm139_vm3, %v240_v54, %v239_v56  ;;  %v318_v30 = vld [vmem:[#allocation3 + $0x1a] sm:$0x1]  ;;  %v333_v32 = vrot.slane %v317_v26, 6  ;;  %v319_v33 = vld [vmem:[#allocation3 + $0x22] sm:$0x1]  ;;  %s902_s13 = sshll.u32 %s1085_s3, 4  ;;  %s903_s13 = int_to_ptr.vmem [resolvable:$true] %s902_s13 }
  0x24   :  { %181 = vmatpush.msra.mxu1 %v1189_v31  ;;  %919 = vmatmul.msk.f32.vlgmr.msra.gmra.mxu2 %vm150_vm7, %v149_v35  ;;  %v243_v61 = vsel %vm142_vm4, %v242_v57, %v241_v59  ;;  %v332_v35 = vsel %vm130_vm0, %v331_v28, %v315_v29  ;;  %v320_v43 = vld [vmem:[#allocation3 + $0x2a] sm:$0x1]  ;;  %v337_v45 = vrot.slane %v319_v33, 4  ;;  %v321_v46 = vld [vmem:[#allocation3 + $0x32] sm:$0x1] }
  0x25   :  { %278 = vmatpush.msra.mxu3 %v1189_v31  ;;  %367 = vmatpush.msra.mxu2 %v1137_v0  ;;  %v245_v63 = vsel %vm145_vm5, %v244_v60, %v243_v61  ;;  %v334_v44 = vsel %vm133_vm1, %v333_v32, %v332_v35  ;;  %v339_v48 = vrot.slane %v320_v43, 3  ;;  %v322_v49 = vld [vmem:[#allocation3 + $0x3a] sm:$0x1]  ;;  %v341_v51 = vrot.slane %v321_v46, 2  ;;  %v417_v25 = vld [vmem:[#allocation3 + $0x2b] sm:$0x1] }
  0x26   :  { %182 = vmatpush.msra.mxu1 %v1197_v34  ;;  %v247_v9 = vsel %vm148_vm6, %v246_v62, %v245_v63  ;;  %v343_v53 = vrot.slane %v322_v49, 1  ;;  %v418_v29 = vld [vmem:[#allocation3 + $0x33] sm:$0x1]  ;;  %v436_v32 = vrot.slane %v417_v25, 3  ;;  %v419_v33 = vld [vmem:[#allocation3 + $0x3b] sm:$0x1] }
  0x27   :  { %279 = vmatpush.msra.mxu3 %v1197_v34  ;;  %368 = vmatpush.msra.mxu2 %v1139_v1 }
  0x28   :  { %183 = vmatpush.msra.mxu1 %v1204_v36 }
  0x29   :  { %280 = vmatpush.msra.mxu3 %v1204_v36  ;;  %369 = vmatpush.msra.mxu2 %v1143_v2 }
  0x2a   :  { %184 = vmatpush.msra.mxu1 %v1210_v37 }
  0x2b   :  { %281 = vmatpush.msra.mxu3 %v1210_v37  ;;  %370 = vmatpush.msra.mxu2 %v1151_v5 }
  0x2c   :  { %185 = vmatpush.msra.mxu1 %v1216_v38  ;;  %920 = vmatmul.msk.f32.vlgmr.msrb.gmra.mxu2 %vm150_vm7, %v247_v9 }
  0x2d   :  { %282 = vmatpush.msra.mxu3 %v1216_v38  ;;  %371 = vmatpush.msra.mxu2 %v1158_v7 }
  0x2e   :  { %186 = vmatpush.msra.mxu1 %v1221_v39 }
  0x2f   :  { %283 = vmatpush.msra.mxu3 %v1221_v39  ;;  %372 = vmatpush.msra.mxu2 %v1167_v15 }
  0x30   :  { %187 = vmatpush.msra.mxu1 %v1226_v40 }
  0x31   :  { %284 = vmatpush.msra.mxu3 %v1226_v40  ;;  %373 = vmatpush.msra.mxu2 %v1173_v22 }
  0x32   :  { %188 = vmatpush.msra.mxu1 %v1231_v41 }
  0x33   :  { %189 = vmatmul.f32.vlgmr.msra.gmra.mxu1 %v86_v42  ;;  %285 = vmatpush.msra.mxu3 %v1231_v41  ;;  %v335_v42 = vrot.slane %v318_v30, 5 }
  0x34   :  { %374 = vmatpush.msra.mxu2 %v1181_v27  ;;  %747 = vmatpush.msrb.mxu1 %v1145_v3 }
  0x35   :  { %553 = vmatpush.msrb.mxu3 %v1145_v3  ;;  %v336_v47 = vsel %vm136_vm2, %v335_v42, %v334_v44  ;;  %v438_v42 = vrot.slane %v418_v29, 2  ;;  %v440_v44 = vrot.slane %v419_v33, 1 }
  0x36   :  { %375 = vmatpush.msra.mxu2 %v1189_v31  ;;  %748 = vmatpush.msrb.mxu1 %v1149_v4  ;;  %v338_v50 = vsel %vm139_vm3, %v337_v45, %v336_v47 }
  0x37   :  { %554 = vmatpush.msrb.mxu3 %v1149_v4  ;;  %v340_v52 = vsel %vm142_vm4, %v339_v48, %v338_v50 }
  0x38   :  { %376 = vmatpush.msra.mxu2 %v1197_v34  ;;  %749 = vmatpush.msrb.mxu1 %v1153_v6  ;;  %v342_v54 = vsel %vm145_vm5, %v341_v51, %v340_v52 }
  0x39   :  { %555 = vmatpush.msrb.mxu3 %v1153_v6  ;;  %v344_v55 = vsel %vm148_vm6, %v343_v53, %v342_v54 }
  0x3a   :  { %377 = vmatpush.msra.mxu2 %v1204_v36  ;;  %750 = vmatpush.msrb.mxu1 %v1161_v8 }
  0x3b   :  { %556 = vmatpush.msrb.mxu3 %v1161_v8  ;;  %921 = vmatmul.msk.f32.vlgmr.msra.gmra.mxu0 %vm150_vm7, %v344_v55 }
  0x3c   :  { %378 = vmatpush.msra.mxu2 %v1210_v37  ;;  %844 = vmatpush.msra.mxu1 %v1145_v3 }
  0x3d   :  { %464 = vmatpush.msra.mxu0 %v1137_v0 }
  0x3e   :  { %379 = vmatpush.msra.mxu2 %v1216_v38  ;;  %845 = vmatpush.msra.mxu1 %v1149_v4 }
  0x3f   :  { %465 = vmatpush.msra.mxu0 %v1139_v1 }
  0x40   :  { %380 = vmatpush.msra.mxu2 %v1221_v39  ;;  %846 = vmatpush.msra.mxu1 %v1153_v6 }
  0x41   :  { %466 = vmatpush.msra.mxu0 %v1143_v2 }
  0x42   :  { %381 = vmatpush.msra.mxu2 %v1226_v40  ;;  %847 = vmatpush.msra.mxu1 %v1161_v8 }
  0x43   :  { %467 = vmatpush.msra.mxu0 %v1151_v5 }
  0x44   :  { %382 = vmatpush.msra.mxu2 %v1231_v41 }
  0x45   :  { %468 = vmatpush.msra.mxu0 %v1158_v7 }
  0x46   :  { %658 = vmatpush.msrb.mxu2 %v1137_v0 }
  0x47   :  { %469 = vmatpush.msra.mxu0 %v1167_v15 }
  0x48   :  { %659 = vmatpush.msrb.mxu2 %v1139_v1 }
  0x49   :  { %470 = vmatpush.msra.mxu0 %v1173_v22 }
  0x4a   :  { %660 = vmatpush.msrb.mxu2 %v1143_v2 }
  0x4b   :  { %471 = vmatpush.msra.mxu0 %v1181_v27 }
  0x4c   :  { %661 = vmatpush.msrb.mxu2 %v1151_v5 }
  0x4d   :  { %472 = vmatpush.msra.mxu0 %v1189_v31 }
  0x4e   :  { %662 = vmatpush.msrb.mxu2 %v1158_v7 }
  0x4f   :  { %473 = vmatpush.msra.mxu0 %v1197_v34 }
  0x50   :  { %663 = vmatpush.msrb.mxu2 %v1167_v15 }
  0x51   :  { %474 = vmatpush.msra.mxu0 %v1204_v36 }
  0x52   :  { %664 = vmatpush.msrb.mxu2 %v1173_v22 }
  0x53   :  { %475 = vmatpush.msra.mxu0 %v1210_v37 }
  0x54   :  { %665 = vmatpush.msrb.mxu2 %v1181_v27 }
  0x55   :  { %476 = vmatpush.msra.mxu0 %v1216_v38 }
  0x56   :  { %666 = vmatpush.msrb.mxu2 %v1189_v31 }
  0x57   :  { %477 = vmatpush.msra.mxu0 %v1221_v39 }
  0x58   :  { %667 = vmatpush.msrb.mxu2 %v1197_v34 }
  0x59   :  { %478 = vmatpush.msra.mxu0 %v1226_v40 }
  0x5a   :  { %668 = vmatpush.msrb.mxu2 %v1204_v36 }
  0x5b   :  { %479 = vmatpush.msra.mxu0 %v1231_v41 }
  0x5c   :  { %669 = vmatpush.msrb.mxu2 %v1210_v37 }
  0x5e   :  { %670 = vmatpush.msrb.mxu2 %v1216_v38 }
  0x60   :  { %671 = vmatpush.msrb.mxu2 %v1221_v39 }
  0x62   :  { %672 = vmatpush.msrb.mxu2 %v1226_v40 }
  0x64   :  { %673 = vmatpush.msrb.mxu2 %v1231_v41 }
  0xa7   :  { %v170_v11 = vpop.f32.mrf.mxu2 }
  0xa8   :  { %v171_v12 = vadd.f32 %v1277_v10, %v170_v11 }
  0xaf   :  { %v267_v56 = vpop.f32.mrf.mxu2 }
  0xb0   :  { %v190_v13 = vpop.f32.mrf.mxu1  ;;  %v268_v57 = vadd.f32 %v1277_v10, %v267_v56 }
  0xb1   :  { %v193_v14 = vadd.f32 %v190_v13, %v171_v12 }
  0xb3   :  { %935 = vtanh.f32 %v193_v14  ;;  %v413_v14 = vld [vmem:[#allocation3 + $0xb] sm:$0x1] }
  0xb8   :  { %v364_v47 = vpop.f32.mrf.mxu0 }
  0xb9   :  { %v936_v16 = vpop.eup %935  ;;  %v365_v48 = vadd.f32 %v1277_v10, %v364_v47  ;;  %v608_v47 = vld [vmem:[#allocation3 + $0x15] sm:$0x1] }
  0xba   :  { %v196_v17 = vrot.slane %v936_v16, 1  ;;  %v197_v18 = vrot.slane %v936_v16, 2  ;;  %v198_v19 = vrot.slane %v936_v16, 3  ;;  %210 = vst [vmem:[#allocation11] sm:$0x1] %v936_v16  ;;  %286 = vmatmul.f32.vlgmr.msra.gmra.mxu3 %v936_v16  ;;  %v199_v20 = vrot.slane %v936_v16, 4 }
  0xbb   :  { %561 = vmatpush.msra.mxu3 %v1137_v0  ;;  %v200_v21 = vrot.slane %v936_v16, 5  ;;  %v201_v23 = vrot.slane %v936_v16, 6  ;;  %v202_v24 = vrot.slane %v936_v16, 7  ;;  %v414_v16 = vld [vmem:[#allocation3 + $0x13] sm:$0x1] }
  0xbc   :  { %211 = vst [vmem:[#allocation11 + $0x8] sm:$0x1] %v196_v17  ;;  %v428_v17 = vrot.slane %v413_v14, 7  ;;  %v514_v14 = vld [vmem:[#allocation3 + $0x2c] sm:$0x1] }
  0xbd   :  { %212 = vst [vmem:[#allocation11 + $0x10] sm:$0x1] %v197_v18  ;;  %562 = vmatpush.msra.mxu3 %v1139_v1  ;;  %v412_v18 = vld [vmem:[#allocation3 + $0x3] sm:$0x1] }
  0xbe   :  { %213 = vst [vmem:[#allocation11 + $0x18] sm:$0x1] %v198_v19  ;;  %v415_v19 = vld [vmem:[#allocation3 + $0x1b] sm:$0x1] }
  0xbf   :  { %214 = vst [vmem:[#allocation11 + $0x20] sm:$0x1] %v199_v20  ;;  %563 = vmatpush.msra.mxu3 %v1143_v2  ;;  %v430_v20 = vrot.slane %v414_v16, 6 }
  0xc0   :  { %215 = vst [vmem:[#allocation11 + $0x28] sm:$0x1] %v200_v21  ;;  %v416_v21 = vld [vmem:[#allocation3 + $0x23] sm:$0x1] }
  0xc1   :  { %216 = vst [vmem:[#allocation11 + $0x30] sm:$0x1] %v201_v23  ;;  %564 = vmatpush.msra.mxu3 %v1151_v5  ;;  %v429_v23 = vsel %vm130_vm0, %v428_v17, %v412_v18  ;;  %v434_v28 = vrot.slane %v416_v21, 4  ;;  %v515_v18 = vld [vmem:[#allocation3 + $0x34] sm:$0x1] }
  0xc2   :  { %217 = vst [vmem:[#allocation11 + $0x38] sm:$0x1] %v202_v24  ;;  %v432_v24 = vrot.slane %v415_v19, 5  ;;  %v431_v26 = vsel %vm133_vm1, %v430_v20, %v429_v23  ;;  %v533_v20 = vrot.slane %v514_v14, 3  ;;  %v516_v21 = vld [vmem:[#allocation3 + $0x3c] sm:$0x1] }
  0xc3   :  { %565 = vmatpush.msra.mxu3 %v1158_v7 }
  0xc4   :  { %v433_v30 = vsel %vm136_vm2, %v432_v24, %v431_v26  ;;  %v535_v24 = vrot.slane %v515_v18, 2  ;;  %v537_v26 = vrot.slane %v516_v21, 1 }
  0xc5   :  { %566 = vmatpush.msra.mxu3 %v1167_v15  ;;  %v435_v35 = vsel %vm139_vm3, %v434_v28, %v433_v30 }
  0xc6   :  { %v437_v43 = vsel %vm142_vm4, %v436_v32, %v435_v35 }
  0xc7   :  { %567 = vmatpush.msra.mxu3 %v1173_v22  ;;  %v439_v45 = vsel %vm145_vm5, %v438_v42, %v437_v43 }
  0xc8   :  { %v441_v46 = vsel %vm148_vm6, %v440_v44, %v439_v45 }
  0xc9   :  { %568 = vmatpush.msra.mxu3 %v1181_v27  ;;  %922 = vmatmul.msk.f32.vlgmr.msrb.gmra.mxu0 %vm150_vm7, %v441_v46 }
  0xca   :  { %755 = vmatpush.msrb.mxu0 %v1137_v0 }
  0xcb   :  { %569 = vmatpush.msra.mxu3 %v1189_v31 }
  0xcc   :  { %756 = vmatpush.msrb.mxu0 %v1139_v1 }
  0xcd   :  { %570 = vmatpush.msra.mxu3 %v1197_v34 }
  0xce   :  { %757 = vmatpush.msrb.mxu0 %v1143_v2 }
  0xcf   :  { %571 = vmatpush.msra.mxu3 %v1204_v36 }
  0xd0   :  { %758 = vmatpush.msrb.mxu0 %v1151_v5 }
  0xd1   :  { %572 = vmatpush.msra.mxu3 %v1210_v37 }
  0xd2   :  { %759 = vmatpush.msrb.mxu0 %v1158_v7 }
  0xd3   :  { %573 = vmatpush.msra.mxu3 %v1216_v38 }
  0xd4   :  { %760 = vmatpush.msrb.mxu0 %v1167_v15 }
  0xd5   :  { %574 = vmatpush.msra.mxu3 %v1221_v39 }
  0xd6   :  { %761 = vmatpush.msrb.mxu0 %v1173_v22 }
  0xd7   :  { %575 = vmatpush.msra.mxu3 %v1226_v40 }
  0xd8   :  { %762 = vmatpush.msrb.mxu0 %v1181_v27 }
  0xd9   :  { %576 = vmatpush.msra.mxu3 %v1231_v41 }
  0xda   :  { %763 = vmatpush.msrb.mxu0 %v1189_v31 }
  0xdc   :  { %764 = vmatpush.msrb.mxu0 %v1197_v34 }
  0xde   :  { %765 = vmatpush.msrb.mxu0 %v1204_v36 }
  0xe0   :  { %766 = vmatpush.msrb.mxu0 %v1210_v37 }
  0xe2   :  { %767 = vmatpush.msrb.mxu0 %v1216_v38 }
  0xe4   :  { %768 = vmatpush.msrb.mxu0 %v1221_v39 }
  0xe6   :  { %769 = vmatpush.msrb.mxu0 %v1226_v40 }
  0xe8   :  { %770 = vmatpush.msrb.mxu0 %v1231_v41 }
 0x13d   :  { %v287_v58 = vpop.f32.mrf.mxu3 }
 0x13e   :  { %v290_v59 = vadd.f32 %v287_v58, %v268_v57 }
 0x140   :  { %937 = vtanh.f32 %v290_v59  ;;  %v510_v59 = vld [vmem:[#allocation3 + $0xc] sm:$0x1] }
 0x146   :  { %v938_v60 = vpop.eup %937  ;;  %v461_v30 = vpop.f32.mrf.mxu0 }
 0x147   :  { %v293_v61 = vrot.slane %v938_v60, 1  ;;  %v294_v62 = vrot.slane %v938_v60, 2  ;;  %v295_v63 = vrot.slane %v938_v60, 3  ;;  %307 = vst [vmem:[#allocation11 + $0x1] sm:$0x1] %v938_v60  ;;  %383 = vmatmul.f32.vlgmr.msra.gmra.mxu2 %v938_v60  ;;  %v296_v9 = vrot.slane %v938_v60, 4 }
 0x148   :  { %v297_v11 = vrot.slane %v938_v60, 5  ;;  %v298_v12 = vrot.slane %v938_v60, 6  ;;  %v299_v13 = vrot.slane %v938_v60, 7  ;;  %v511_v60 = vld [vmem:[#allocation3 + $0x14] sm:$0x1]  ;;  %v462_v32 = vadd.f32 %v1277_v10, %v461_v30 }
 0x149   :  { %308 = vst [vmem:[#allocation11 + $0x9] sm:$0x1] %v293_v61  ;;  %v525_v61 = vrot.slane %v510_v59, 7  ;;  %v705_v30 = vld [vmem:[#allocation3 + $0x16] sm:$0x1] }
 0x14a   :  { %309 = vst [vmem:[#allocation11 + $0x11] sm:$0x1] %v294_v62  ;;  %v509_v62 = vld [vmem:[#allocation3 + $0x4] sm:$0x1] }
 0x14b   :  { %310 = vst [vmem:[#allocation11 + $0x19] sm:$0x1] %v295_v63  ;;  %v512_v63 = vld [vmem:[#allocation3 + $0x1c] sm:$0x1] }
 0x14c   :  { %311 = vst [vmem:[#allocation11 + $0x21] sm:$0x1] %v296_v9  ;;  %v527_v9 = vrot.slane %v511_v60, 6 }
 0x14d   :  { %312 = vst [vmem:[#allocation11 + $0x29] sm:$0x1] %v297_v11  ;;  %v513_v11 = vld [vmem:[#allocation3 + $0x24] sm:$0x1] }
 0x14e   :  { %313 = vst [vmem:[#allocation11 + $0x31] sm:$0x1] %v298_v12  ;;  %v526_v12 = vsel %vm130_vm0, %v525_v61, %v509_v62  ;;  %v531_v17 = vrot.slane %v513_v11, 4  ;;  %v613_v61 = vld [vmem:[#allocation3 + $0x3d] sm:$0x1] }
 0x14f   :  { %314 = vst [vmem:[#allocation11 + $0x39] sm:$0x1] %v299_v13  ;;  %v529_v13 = vrot.slane %v512_v63, 5  ;;  %v528_v16 = vsel %vm133_vm1, %v527_v9, %v526_v12  ;;  %v634_v11 = vrot.slane %v613_v61, 1  ;;  %v805_v61 = vld [vmem:[#allocation3 + $0x2f] sm:$0x1] }
 0x151   :  { %v530_v19 = vsel %vm136_vm2, %v529_v13, %v528_v16 }
 0x152   :  { %v532_v23 = vsel %vm139_vm3, %v531_v17, %v530_v19 }
 0x153   :  { %v534_v25 = vsel %vm142_vm4, %v533_v20, %v532_v23 }
 0x154   :  { %v536_v28 = vsel %vm145_vm5, %v535_v24, %v534_v25 }
 0x155   :  { %v538_v29 = vsel %vm148_vm6, %v537_v26, %v536_v28 }
 0x156   :  { %923 = vmatmul.msk.f32.vlgmr.msrb.gmra.mxu3 %vm150_vm7, %v538_v29  ;;  %v704_v29 = vld [vmem:[#allocation3 + $0xe] sm:$0x1] }
 0x157   :  { %650 = vmatpush.msrb.mxu3 %v1145_v3 }
 0x159   :  { %651 = vmatpush.msrb.mxu3 %v1149_v4 }
 0x15b   :  { %652 = vmatpush.msrb.mxu3 %v1153_v6 }
 0x15d   :  { %653 = vmatpush.msrb.mxu3 %v1161_v8  ;;  %v607_v8 = vld [vmem:[#allocation3 + $0xd] sm:$0x1] }
 0x1ca   :  { %v384_v49 = vpop.f32.mrf.mxu2 }
 0x1cb   :  { %v387_v50 = vadd.f32 %v384_v49, %v365_v48  ;;  %v622_v48 = vrot.slane %v607_v8, 7  ;;  %v606_v49 = vld [vmem:[#allocation3 + $0x5] sm:$0x1] }
 0x1cd   :  { %939 = vtanh.f32 %v387_v50  ;;  %v609_v50 = vld [vmem:[#allocation3 + $0x1d] sm:$0x1] }
 0x1d3   :  { %v940_v51 = vpop.eup %939 }
 0x1d4   :  { %v390_v52 = vrot.slane %v940_v51, 1  ;;  %v391_v53 = vrot.slane %v940_v51, 2  ;;  %v392_v54 = vrot.slane %v940_v51, 3  ;;  %404 = vst [vmem:[#allocation11 + $0x2] sm:$0x1] %v940_v51  ;;  %480 = vmatmul.f32.vlgmr.msra.gmra.mxu0 %v940_v51  ;;  %v393_v55 = vrot.slane %v940_v51, 4 }
 0x1d5   :  { %v394_v56 = vrot.slane %v940_v51, 5  ;;  %v395_v57 = vrot.slane %v940_v51, 6  ;;  %v396_v58 = vrot.slane %v940_v51, 7  ;;  %v624_v51 = vrot.slane %v608_v47, 6 }
 0x1d6   :  { %405 = vst [vmem:[#allocation11 + $0xa] sm:$0x1] %v390_v52  ;;  %v610_v52 = vld [vmem:[#allocation3 + $0x25] sm:$0x1] }
 0x1d7   :  { %406 = vst [vmem:[#allocation11 + $0x12] sm:$0x1] %v391_v53  ;;  %v623_v53 = vsel %vm130_vm0, %v622_v48, %v606_v49  ;;  %v710_v48 = vld [vmem:[#allocation3 + $0x3e] sm:$0x1] }
 0x1d8   :  { %407 = vst [vmem:[#allocation11 + $0x1a] sm:$0x1] %v392_v54  ;;  %v626_v54 = vrot.slane %v609_v50, 5 }
 0x1d9   :  { %408 = vst [vmem:[#allocation11 + $0x22] sm:$0x1] %v393_v55  ;;  %v611_v55 = vld [vmem:[#allocation3 + $0x2d] sm:$0x1]  ;;  %v558_v14 = vpop.f32.mrf.mxu3 }
 0x1da   :  { %409 = vst [vmem:[#allocation11 + $0x2a] sm:$0x1] %v394_v56  ;;  %v625_v56 = vsel %vm133_vm1, %v624_v51, %v623_v53  ;;  %v630_v60 = vrot.slane %v611_v55, 3  ;;  %v559_v16 = vadd.f32 %v1277_v10, %v558_v14 }
 0x1db   :  { %410 = vst [vmem:[#allocation11 + $0x32] sm:$0x1] %v395_v57  ;;  %v628_v57 = vrot.slane %v610_v52, 4  ;;  %v627_v59 = vsel %vm136_vm2, %v626_v54, %v625_v56  ;;  %v731_v52 = vrot.slane %v710_v48, 1 }
 0x1dc   :  { %411 = vst [vmem:[#allocation11 + $0x3a] sm:$0x1] %v396_v58  ;;  %v612_v58 = vld [vmem:[#allocation3 + $0x35] sm:$0x1] }
 0x1dd   :  { %v629_v62 = vsel %vm139_vm3, %v628_v57, %v627_v59  ;;  %v632_v63 = vrot.slane %v612_v58, 2  ;;  %v804_v59 = vld [vmem:[#allocation3 + $0x27] sm:$0x1] }
 0x1de   :  { %v631_v9 = vsel %vm142_vm4, %v630_v60, %v629_v62 }
 0x1df   :  { %v633_v12 = vsel %vm145_vm5, %v632_v63, %v631_v9  ;;  %v806_v63 = vld [vmem:[#allocation3 + $0x37] sm:$0x1] }
 0x1e0   :  { %v635_v13 = vsel %vm148_vm6, %v634_v11, %v633_v12  ;;  %v824_v11 = vrot.slane %v805_v61, 3  ;;  %v807_v12 = vld [vmem:[#allocation3 + $0x3f] sm:$0x1]  ;;  %v826_v14 = vrot.slane %v806_v63, 2 }
 0x251   :  { %v481_v33 = vpop.f32.mrf.mxu0 }
 0x252   :  { %v484_v35 = vadd.f32 %v481_v33, %v462_v32  ;;  %v719_v32 = vrot.slane %v704_v29, 7  ;;  %v703_v33 = vld [vmem:[#allocation3 + $0x6] sm:$0x1] }
 0x254   :  { %941 = vtanh.f32 %v484_v35  ;;  %v706_v35 = vld [vmem:[#allocation3 + $0x1e] sm:$0x1] }
 0x25a   :  { %v942_v42 = vpop.eup %941 }
 0x25b   :  { %v487_v43 = vrot.slane %v942_v42, 1  ;;  %v488_v44 = vrot.slane %v942_v42, 2  ;;  %v489_v45 = vrot.slane %v942_v42, 3  ;;  %501 = vst [vmem:[#allocation11 + $0x3] sm:$0x1] %v942_v42  ;;  %577 = vmatmul.f32.vlgmr.msra.gmra.mxu3 %v942_v42  ;;  %v490_v46 = vrot.slane %v942_v42, 4 }
 0x25c   :  { %v491_v3 = vrot.slane %v942_v42, 5  ;;  %v492_v4 = vrot.slane %v942_v42, 6  ;;  %v493_v6 = vrot.slane %v942_v42, 7  ;;  %v721_v42 = vrot.slane %v705_v30, 6 }
 0x25d   :  { %502 = vst [vmem:[#allocation11 + $0xb] sm:$0x1] %v487_v43  ;;  %v707_v43 = vld [vmem:[#allocation3 + $0x26] sm:$0x1] }
 0x25e   :  { %503 = vst [vmem:[#allocation11 + $0x13] sm:$0x1] %v488_v44  ;;  %v720_v44 = vsel %vm130_vm0, %v719_v32, %v703_v33 }
 0x25f   :  { %504 = vst [vmem:[#allocation11 + $0x1b] sm:$0x1] %v489_v45  ;;  %v723_v45 = vrot.slane %v706_v35, 5 }
 0x260   :  { %505 = vst [vmem:[#allocation11 + $0x23] sm:$0x1] %v490_v46  ;;  %v708_v46 = vld [vmem:[#allocation3 + $0x2e] sm:$0x1] }
 0x261   :  { %506 = vst [vmem:[#allocation11 + $0x2b] sm:$0x1] %v491_v3  ;;  %v722_v3 = vsel %vm133_vm1, %v721_v42, %v720_v44  ;;  %v727_v47 = vrot.slane %v708_v46, 3 }
 0x262   :  { %507 = vst [vmem:[#allocation11 + $0x33] sm:$0x1] %v492_v4  ;;  %v725_v4 = vrot.slane %v707_v43, 4  ;;  %v724_v8 = vsel %vm136_vm2, %v723_v45, %v722_v3 }
 0x263   :  { %508 = vst [vmem:[#allocation11 + $0x3b] sm:$0x1] %v493_v6  ;;  %924 = vmatmul.msk.f32.vlgmr.msrb.gmra.mxu3 %vm150_vm7, %v635_v13  ;;  %v709_v6 = vld [vmem:[#allocation3 + $0x36] sm:$0x1] }
 0x264   :  { %v726_v49 = vsel %vm139_vm3, %v725_v4, %v724_v8  ;;  %v729_v50 = vrot.slane %v709_v6, 2 }
 0x265   :  { %v728_v51 = vsel %vm142_vm4, %v727_v47, %v726_v49 }
 0x266   :  { %v730_v53 = vsel %vm145_vm5, %v729_v50, %v728_v51 }
 0x267   :  { %v732_v54 = vsel %vm148_vm6, %v731_v52, %v730_v53 }
 0x268   :  { %925 = vmatmul.msk.f32.vlgmr.msrb.gmra.mxu1 %vm150_vm7, %v732_v54 }
 0x269   :  { %852 = vmatpush.msrb.mxu1 %v1137_v0 }
 0x26b   :  { %853 = vmatpush.msrb.mxu1 %v1139_v1 }
 0x26d   :  { %854 = vmatpush.msrb.mxu1 %v1143_v2 }
 0x26f   :  { %855 = vmatpush.msrb.mxu1 %v1151_v5 }
 0x271   :  { %856 = vmatpush.msrb.mxu1 %v1158_v7 }
 0x273   :  { %857 = vmatpush.msrb.mxu1 %v1167_v15 }
 0x275   :  { %858 = vmatpush.msrb.mxu1 %v1173_v22 }
 0x277   :  { %859 = vmatpush.msrb.mxu1 %v1181_v27 }
 0x279   :  { %860 = vmatpush.msrb.mxu1 %v1189_v31 }
 0x27b   :  { %861 = vmatpush.msrb.mxu1 %v1197_v34  ;;  %v801_v34 = vld [vmem:[#allocation3 + $0xf] sm:$0x1] }
 0x27d   :  { %862 = vmatpush.msrb.mxu1 %v1204_v36  ;;  %v802_v36 = vld [vmem:[#allocation3 + $0x17] sm:$0x1] }
 0x27e   :  { %v818_v58 = vrot.slane %v802_v36, 6 }
 0x27f   :  { %863 = vmatpush.msrb.mxu1 %v1210_v37  ;;  %v816_v37 = vrot.slane %v801_v34, 7 }
 0x281   :  { %864 = vmatpush.msrb.mxu1 %v1216_v38  ;;  %v800_v38 = vld [vmem:[#allocation3 + $0x7] sm:$0x1] }
 0x283   :  { %865 = vmatpush.msrb.mxu1 %v1221_v39  ;;  %v803_v39 = vld [vmem:[#allocation3 + $0x1f] sm:$0x1] }
 0x284   :  { %v820_v60 = vrot.slane %v803_v39, 5 }
 0x285   :  { %866 = vmatpush.msrb.mxu1 %v1226_v40  ;;  %v817_v40 = vsel %vm130_vm0, %v816_v37, %v800_v38 }
 0x286   :  { %v819_v62 = vsel %vm133_vm1, %v818_v58, %v817_v40 }
 0x287   :  { %867 = vmatpush.msrb.mxu1 %v1231_v41  ;;  %v822_v41 = vrot.slane %v804_v59, 4  ;;  %v821_v9 = vsel %vm136_vm2, %v820_v60, %v819_v62 }
 0x289   :  { %v823_v13 = vsel %vm139_vm3, %v822_v41, %v821_v9 }
 0x2de   :  { %v578_v17 = vpop.f32.mrf.mxu3 }
 0x2df   :  { %v581_v18 = vadd.f32 %v578_v17, %v559_v16  ;;  %v825_v16 = vsel %vm142_vm4, %v824_v11, %v823_v13  ;;  %v828_v17 = vrot.slane %v807_v12, 1 }
 0x2e1   :  { %943 = vtanh.f32 %v581_v18  ;;  %v827_v18 = vsel %vm145_vm5, %v826_v14, %v825_v16 }
 0x2e6   :  { %v655_v55 = vpop.f32.mrf.mxu3 }
 0x2e7   :  { %v944_v19 = vpop.eup %943  ;;  %v656_v56 = vadd.f32 %v1277_v10, %v655_v55 }
 0x2e8   :  { %v584_v20 = vrot.slane %v944_v19, 1  ;;  %v585_v21 = vrot.slane %v944_v19, 2  ;;  %v586_v23 = vrot.slane %v944_v19, 3  ;;  %598 = vst [vmem:[#allocation11 + $0x4] sm:$0x1] %v944_v19  ;;  %674 = vmatmul.f32.vlgmr.msrb.gmra.mxu2 %v944_v19  ;;  %v587_v24 = vrot.slane %v944_v19, 4 }
 0x2e9   :  { %v588_v25 = vrot.slane %v944_v19, 5  ;;  %v589_v26 = vrot.slane %v944_v19, 6  ;;  %v590_v28 = vrot.slane %v944_v19, 7  ;;  %v829_v19 = vsel %vm148_vm6, %v828_v17, %v827_v18 }
 0x2ea   :  { %599 = vst [vmem:[#allocation11 + $0xc] sm:$0x1] %v584_v20  ;;  %926 = vmatmul.msk.f32.vlgmr.msra.gmra.mxu1 %vm150_vm7, %v829_v19  ;;  %v752_v20 = vpop.f32.mrf.mxu1 }
 0x2eb   :  { %600 = vst [vmem:[#allocation11 + $0x14] sm:$0x1] %v585_v21  ;;  %v753_v21 = vadd.f32 %v1277_v10, %v752_v20 }
 0x2ec   :  { %601 = vst [vmem:[#allocation11 + $0x1c] sm:$0x1] %v586_v23 }
 0x2ed   :  { %602 = vst [vmem:[#allocation11 + $0x24] sm:$0x1] %v587_v24 }
 0x2ee   :  { %603 = vst [vmem:[#allocation11 + $0x2c] sm:$0x1] %v588_v25 }
 0x2ef   :  { %604 = vst [vmem:[#allocation11 + $0x34] sm:$0x1] %v589_v26 }
 0x2f0   :  { %605 = vst [vmem:[#allocation11 + $0x3c] sm:$0x1] %v590_v28 }
 0x367   :  { %v849_v42 = vpop.f32.mrf.mxu1 }
 0x368   :  { %v850_v43 = vadd.f32 %v1277_v10, %v849_v42 }
 0x36b   :  { %v675_v0 = vpop.f32.mrf.mxu2 }
 0x36c   :  { %v678_v57 = vadd.f32 %v675_v0, %v656_v56 }
 0x36e   :  { %945 = vtanh.f32 %v678_v57 }
 0x374   :  { %v946_v1 = vpop.eup %945 }
 0x375   :  { %v681_v2 = vrot.slane %v946_v1, 1  ;;  %v682_v5 = vrot.slane %v946_v1, 2  ;;  %v683_v7 = vrot.slane %v946_v1, 3  ;;  %695 = vst [vmem:[#allocation11 + $0x5] sm:$0x1] %v946_v1  ;;  %771 = vmatmul.f32.vlgmr.msrb.gmra.mxu0 %v946_v1  ;;  %v684_v15 = vrot.slane %v946_v1, 4 }
 0x376   :  { %v685_v22 = vrot.slane %v946_v1, 5  ;;  %v686_v27 = vrot.slane %v946_v1, 6  ;;  %v687_v31 = vrot.slane %v946_v1, 7 }
 0x377   :  { %696 = vst [vmem:[#allocation11 + $0xd] sm:$0x1] %v681_v2 }
 0x378   :  { %697 = vst [vmem:[#allocation11 + $0x15] sm:$0x1] %v682_v5 }
 0x379   :  { %698 = vst [vmem:[#allocation11 + $0x1d] sm:$0x1] %v683_v7 }
 0x37a   :  { %699 = vst [vmem:[#allocation11 + $0x25] sm:$0x1] %v684_v15 }
 0x37b   :  { %700 = vst [vmem:[#allocation11 + $0x2d] sm:$0x1] %v685_v22 }
 0x37c   :  { %701 = vst [vmem:[#allocation11 + $0x35] sm:$0x1] %v686_v27 }
 0x37d   :  { %702 = vst [vmem:[#allocation11 + $0x3d] sm:$0x1] %v687_v31 }
 0x3f2   :  { %v772_v23 = vpop.f32.mrf.mxu0 }
 0x3f3   :  { %v775_v24 = vadd.f32 %v772_v23, %v753_v21 }
 0x3f5   :  { %947 = vtanh.f32 %v775_v24 }
 0x3fb   :  { %v948_v25 = vpop.eup %947 }
 0x3fc   :  { %v778_v26 = vrot.slane %v948_v25, 1  ;;  %v779_v28 = vrot.slane %v948_v25, 2  ;;  %v780_v29 = vrot.slane %v948_v25, 3  ;;  %792 = vst [vmem:[#allocation11 + $0x6] sm:$0x1] %v948_v25  ;;  %868 = vmatmul.f32.vlgmr.msrb.gmra.mxu1 %v948_v25  ;;  %v781_v30 = vrot.slane %v948_v25, 4 }
 0x3fd   :  { %v782_v32 = vrot.slane %v948_v25, 5  ;;  %v783_v33 = vrot.slane %v948_v25, 6  ;;  %v784_v35 = vrot.slane %v948_v25, 7 }
 0x3fe   :  { %793 = vst [vmem:[#allocation11 + $0xe] sm:$0x1] %v778_v26 }
 0x3ff   :  { %794 = vst [vmem:[#allocation11 + $0x16] sm:$0x1] %v779_v28 }
 0x400   :  { %795 = vst [vmem:[#allocation11 + $0x1e] sm:$0x1] %v780_v29 }
 0x401   :  { %796 = vst [vmem:[#allocation11 + $0x26] sm:$0x1] %v781_v30 }
 0x402   :  { %797 = vst [vmem:[#allocation11 + $0x2e] sm:$0x1] %v782_v32 }
 0x403   :  { %798 = vst [vmem:[#allocation11 + $0x36] sm:$0x1] %v783_v33 }
 0x404   :  { %799 = vst [vmem:[#allocation11 + $0x3e] sm:$0x1] %v784_v35 }
 0x479   :  { %v869_v44 = vpop.f32.mrf.mxu1 }
 0x47a   :  { %v872_v45 = vadd.f32 %v869_v44, %v850_v43 }
 0x47c   :  { %949 = vtanh.f32 %v872_v45 }
 0x482   :  { %v950_v46 = vpop.eup %949 }
 0x483   :  { %v875_v3 = vrot.slane %v950_v46, 1  ;;  %v876_v4 = vrot.slane %v950_v46, 2  ;;  %v877_v6 = vrot.slane %v950_v46, 3  ;;  %889 = vst [vmem:[#allocation11 + $0x7] sm:$0x1] %v950_v46  ;;  %v878_v8 = vrot.slane %v950_v46, 4 }
 0x484   :  { %v879_v47 = vrot.slane %v950_v46, 5  ;;  %v880_v48 = vrot.slane %v950_v46, 6  ;;  %v881_v10 = vrot.slane %v950_v46, 7 }
 0x485   :  { %890 = vst [vmem:[#allocation11 + $0xf] sm:$0x1] %v875_v3 }
 0x486   :  { %891 = vst [vmem:[#allocation11 + $0x17] sm:$0x1] %v876_v4 }
 0x487   :  { %892 = vst [vmem:[#allocation11 + $0x1f] sm:$0x1] %v877_v6 }
 0x488   :  { %893 = vst [vmem:[#allocation11 + $0x27] sm:$0x1] %v878_v8 }
 0x489   :  { %894 = vst [vmem:[#allocation11 + $0x2f] sm:$0x1] %v879_v47 }
 0x48a   :  { %895 = vst [vmem:[#allocation11 + $0x37] sm:$0x1] %v880_v48 }
 0x48b   :  { %896 = vst [vmem:[#allocation11 + $0x3f] sm:$0x1] %v881_v10 }
 0x48c   :  { %910 = dma.vmem_to_hbm [thread:$0]  %s903_s13, 1024, %s905_s16, [#allocation5], %s1080_s26, %s1080_s26, %s1081_s27  }
 0x48d   :  { %1077 = dma.done.wait [#allocation5], 1024  }
 0x48e   :  { %1078 = vsyncadd [#allocation5], 4294966272 }
 0x48f   :  { %915 = vsyncpa [#allocation4], 1 }
 0x490   :  { %916 = vsyncpa [#allocation7], 1 }
 0x491   :  { %917 = vsyncpa [#allocation10], 1 }
 0x492   :  { %918 = vsyncpa [#allocation5], 1 }

</bundles_post_ra>
